<compile_context>
chip_gen: v7x
topology: tpu7x:2x2x1
jax: 0.10.0
libtpu: 0.0.40
codegen_flags: <defaults>
</compile_context>

<pallas_src>
import functools

import jax
import jax.numpy as jnp
from jax.experimental import pallas as pl
from jax.experimental.pallas import tpu as pltpu


# ------------------------------- kernels ---------------------------------


def _aggregate_kernel(x_ref, w1_ref, b1_ref, w2_ref, b2_ref, o_ref):
    """fc2(relu(fc1(x))) on one (TILE_B, C) batch tile."""
    x = x_ref[...]                                            # (TILE_B, C)
    h = jnp.dot(x, w1_ref[...],
                preferred_element_type=jnp.float32)           # (TILE_B, C)
    h = jnp.maximum(h + b1_ref[...], 0.0)                     # bias + ReLU
    y = jnp.dot(h.astype(w2_ref.dtype), w2_ref[...],
                preferred_element_type=jnp.float32)           # (TILE_B, O_pad)
    o_ref[...] = (y + b2_ref[...]).astype(o_ref.dtype)


def _fc2_only_kernel(x_ref, w2_ref, b2_ref, o_ref):
    """layer == 1 branch: fc2(x) only."""
    y = jnp.dot(x_ref[...], w2_ref[...],
                preferred_element_type=jnp.float32)
    o_ref[...] = (y + b2_ref[...]).astype(o_ref.dtype)


# ------------------------------- wrapper ----------------------------------


def _round_up(v, m):
    return ((v + m - 1) // m) * m


@functools.partial(jax.jit, static_argnames=("layer", "tile_b"))
def aggregate_forward(x, w1_t, b1, w2_t, b2, *, layer=2, tile_b=512):
    """Aggregate forward.

    x:    (B, C)
    w1_t: (C, C)  == fc1.weight.T   (unused when layer == 1)
    b1:   (C,)    == fc1.bias       (unused when layer == 1)
    w2_t: (C, O)  == fc2.weight.T
    b2:   (O,)    == fc2.bias
    """
    B, C = x.shape
    O = w2_t.shape[1]

    # ---- static (trace-time) preparation -------------------------------
    # Lane-dense output: pad fc2 to a multiple of 128 output columns.
    O_pad = _round_up(max(O, 128), 128)
    w2_p = jnp.zeros((C, O_pad), dtype=w2_t.dtype).at[:, :O].set(w2_t)
    b2_p = jnp.zeros((1, O_pad), dtype=b2.dtype).at[:, :O].set(b2)
    b1_2d = b1.reshape(1, C)

    # Batch tiling: large tiles, padded so B_pad % TILE_B == 0 and the
    # sublane dim is a multiple of 8.
    TILE_B = min(tile_b, _round_up(B, 8))
    B_pad = _round_up(B, TILE_B)
    if B_pad != B:
        x_p = jnp.zeros((B_pad, C), dtype=x.dtype).at[:B, :].set(x)
    else:
        x_p = x
    grid = (B_pad // TILE_B,)

    itemsize = jnp.dtype(x.dtype).itemsize
    compiler_params = pltpu.CompilerParams(
        dimension_semantics=("parallel",))

    if layer == 1:
        cost = pl.CostEstimate(
            flops=2 * B_pad * C * O_pad,
            transcendentals=0,
            bytes_accessed=(B_pad * C + C * O_pad + O_pad
                            + B_pad * O_pad) * itemsize)
        out_p = pl.pallas_call(
            _fc2_only_kernel,
            out_shape=jax.ShapeDtypeStruct((B_pad, O_pad), x.dtype),
            grid_spec=pl.GridSpec(
                grid=grid,
                in_specs=[
                    pl.BlockSpec((TILE_B, C), lambda i: (i, 0)),
                    pl.BlockSpec((C, O_pad), lambda i: (0, 0)),
                    pl.BlockSpec((1, O_pad), lambda i: (0, 0)),
                ],
                out_specs=pl.BlockSpec((TILE_B, O_pad), lambda i: (i, 0)),
            ),
            compiler_params=compiler_params,
            cost_estimate=cost,
        )(x_p, w2_p, b2_p)
        return out_p[:B, :O]

    cost = pl.CostEstimate(
        flops=2 * B_pad * C * C + 2 * B_pad * C * O_pad,
        transcendentals=0,
        bytes_accessed=(B_pad * C + C * C + C + C * O_pad + O_pad
                        + B_pad * O_pad) * itemsize)

    out_p = pl.pallas_call(
        _aggregate_kernel,
        out_shape=jax.ShapeDtypeStruct((B_pad, O_pad), x.dtype),
        grid_spec=pl.GridSpec(
            grid=grid,
            in_specs=[
                # streamed over batch
                pl.BlockSpec((TILE_B, C), lambda i: (i, 0)),
                # VMEM-resident parameters (constant block index -> one DMA)
                pl.BlockSpec((C, C), lambda i: (0, 0)),
                pl.BlockSpec((1, C), lambda i: (0, 0)),
                pl.BlockSpec((C, O_pad), lambda i: (0, 0)),
                pl.BlockSpec((1, O_pad), lambda i: (0, 0)),
            ],
            out_specs=pl.BlockSpec((TILE_B, O_pad), lambda i: (i, 0)),
        ),
        compiler_params=compiler_params,
        cost_estimate=cost,
    )(x_p, w1_t, b1_2d, w2_p, b2_p)

    # Drop the batch padding and the lane padding of the 10-wide output.
    return out_p[:B, :O]


# ------------------------------ reference ---------------------------------


def _ref_forward(x, w1_t, b1, w2_t, b2, layer=2):
    if layer != 1:
        x = jnp.maximum(x @ w1_t + b1, 0.0)
    return x @ w2_t + b2


# --------------------------------- test -----------------------------------


if __name__ == "__main__":
    key = jax.random.PRNGKey(0)
    num_concepts = 32
    num_classes = 10

    kx, k1w, k1b, k2w, k2b, kx2 = jax.random.split(key, 6)

    # nn.Linear-style init (shapes only; values deterministic).
    bound = 1.0 / (num_concepts ** 0.5)
    w1 = jax.random.uniform(k1w, (num_concepts, num_concepts),
                            minval=-bound, maxval=bound, dtype=jnp.float32)
    b1 = jax.random.uniform(k1b, (num_concepts,),
                            minval=-bound, maxval=bound, dtype=jnp.float32)
    w2 = jax.random.uniform(k2w, (num_classes, num_concepts),
                            minval=-bound, maxval=bound, dtype=jnp.float32)
    b2 = jax.random.uniform(k2b, (num_classes,),
                            minval=-bound, maxval=bound, dtype=jnp.float32)
    w1_t = w1.T   # (C, C) in->out
    w2_t = w2.T   # (C, 10) in->out

    # Case 1: small batch (the nominal module shape), layer != 1.
    x_small = jax.random.normal(kx, (8, num_concepts), dtype=jnp.float32)
    out_small = jax.block_until_ready(
        aggregate_forward(x_small, w1_t, b1, w2_t, b2, layer=2))
    ref_small = _ref_forward(x_small, w1_t, b1, w2_t, b2, layer=2)
    assert out_small.shape == (8, num_classes)
    assert jnp.allclose(out_small, ref_small, atol=1e-5, rtol=1e-5)

    # Case 2: larger, non-multiple batch -> exercises batch tiling + padding.
    x_big = jax.random.normal(kx2, (1000, num_concepts), dtype=jnp.float32)
    out_big = jax.block_until_ready(
        aggregate_forward(x_big, w1_t, b1, w2_t, b2, layer=2, tile_b=512))
    ref_big = _ref_forward(x_big, w1_t, b1, w2_t, b2, layer=2)
    assert out_big.shape == (1000, num_classes)
    assert jnp.allclose(out_big, ref_big, atol=1e-5, rtol=1e-5)

    # Case 3: layer == 1 branch (fc2 only).
    out_l1 = jax.block_until_ready(
        aggregate_forward(x_small, w1_t, b1, w2_t, b2, layer=1))
    ref_l1 = _ref_forward(x_small, w1_t, b1, w2_t, b2, layer=1)
    assert out_l1.shape == (8, num_classes)
    assert jnp.allclose(out_l1, ref_l1, atol=1e-5, rtol=1e-5)

    # TODO(synk): optional bf16 weight/activation path (cast in the wrapper,
    # keep f32 accumulation) for halved HBM traffic at large B.

    print("KERNEL_OK")
</pallas_src>

<mosaic_0001>
module attributes {stable_mosaic.version = 11 : i64} {
  func.func @_aggregate_kernel(%arg0: i32, %arg1: memref<8x32xf32, #tpu.memory_space<vmem>>, %arg2: memref<32x32xf32, #tpu.memory_space<vmem>>, %arg3: memref<1x32xf32, #tpu.memory_space<vmem>>, %arg4: memref<32x128xf32, #tpu.memory_space<vmem>>, %arg5: memref<1x128xf32, #tpu.memory_space<vmem>>, %arg6: memref<8x128xf32, #tpu.memory_space<vmem>>) attributes {dimension_semantics = [#tpu.dimension_semantics<parallel>], iteration_bounds = array<i64: 1>, scalar_prefetch = 0 : i64, scratch_operands = 0 : i64, tpu.core_type = #tpu.core_type<tc>, window_params = [{transform_indices = @transform_0, window_bounds = array<i64: 8, 32>}, {pipeline_mode = #tpu.pipeline_mode<synchronous>, transform_indices = @transform_1, window_bounds = array<i64: 32, 32>}, {pipeline_mode = #tpu.pipeline_mode<synchronous>, transform_indices = @transform_2, window_bounds = array<i64: 1, 32>}, {pipeline_mode = #tpu.pipeline_mode<synchronous>, transform_indices = @transform_3, window_bounds = array<i64: 32, 128>}, {pipeline_mode = #tpu.pipeline_mode<synchronous>, transform_indices = @transform_4, window_bounds = array<i64: 1, 128>}, {transform_indices = @transform_5, window_bounds = array<i64: 8, 128>}]} {
    %c0 = arith.constant 0 : index
    %c0_0 = arith.constant 0 : index
    %0 = vector.load %arg1[%c0, %c0_0] : memref<8x32xf32, #tpu.memory_space<vmem>>, vector<8x32xf32>
    %c0_1 = arith.constant 0 : index
    %c0_2 = arith.constant 0 : index
    %1 = vector.load %arg2[%c0_1, %c0_2] : memref<32x32xf32, #tpu.memory_space<vmem>>, vector<32x32xf32>
    %cst = arith.constant dense<0.000000e+00> : vector<8x32xf32>
    %2 = tpu.matmul %0, %1, %cst {dimension_numbers = #tpu.dot_dimension_numbers<[1], [0], [0], [1], [0, 0, 1, 1], [], []>} : vector<8x32xf32>, vector<32x32xf32>, vector<8x32xf32> -> vector<8x32xf32>
    %c0_3 = arith.constant 0 : index
    %c0_4 = arith.constant 0 : index
    %3 = vector.load %arg3[%c0_3, %c0_4] : memref<1x32xf32, #tpu.memory_space<vmem>>, vector<1x32xf32>
    %4 = vector.broadcast %3 : vector<1x32xf32> to vector<8x32xf32>
    %5 = arith.addf %2, %4 : vector<8x32xf32>
    %cst_5 = arith.constant 0.000000e+00 : f32
    %6 = vector.broadcast %cst_5 : f32 to vector<8x32xf32>
    %7 = arith.maximumf %5, %6 : vector<8x32xf32>
    %c0_6 = arith.constant 0 : index
    %c0_7 = arith.constant 0 : index
    %8 = vector.load %arg4[%c0_6, %c0_7] : memref<32x128xf32, #tpu.memory_space<vmem>>, vector<32x128xf32>
    %cst_8 = arith.constant dense<0.000000e+00> : vector<8x128xf32>
    %9 = tpu.matmul %7, %8, %cst_8 {dimension_numbers = #tpu.dot_dimension_numbers<[1], [0], [0], [1], [0, 0, 1, 1], [], []>} : vector<8x32xf32>, vector<32x128xf32>, vector<8x128xf32> -> vector<8x128xf32>
    %c0_9 = arith.constant 0 : index
    %c0_10 = arith.constant 0 : index
    %10 = vector.load %arg5[%c0_9, %c0_10] : memref<1x128xf32, #tpu.memory_space<vmem>>, vector<1x128xf32>
    %11 = vector.broadcast %10 : vector<1x128xf32> to vector<8x128xf32>
    %12 = arith.addf %9, %11 : vector<8x128xf32>
    %c0_11 = arith.constant 0 : index
    %c0_12 = arith.constant 0 : index
    %13 = vector.load %arg6[%c0_11, %c0_12] : memref<8x128xf32, #tpu.memory_space<vmem>>, vector<8x128xf32>
    tpu.vector_store %arg6[%c0_11, %c0_12], %12 {strides = array<i32>} : memref<8x128xf32, #tpu.memory_space<vmem>>, vector<8x128xf32>,
    return
  }
  func.func @transform_0(%arg0: i32) -> (i32, i32) {
    %c0_i32 = arith.constant 0 : i32
    %c0_i32_0 = arith.constant 0 : i32
    return %arg0, %c0_i32 : i32, i32
  }
  func.func @transform_1(%arg0: i32) -> (i32, i32) {
    %c0_i32 = arith.constant 0 : i32
    %c0_i32_0 = arith.constant 0 : i32
    %c0_i32_1 = arith.constant 0 : i32
    return %c0_i32, %c0_i32_0 : i32, i32
  }
  func.func @transform_2(%arg0: i32) -> (i32, i32) {
    %c0_i32 = arith.constant 0 : i32
    %c0_i32_0 = arith.constant 0 : i32
    %c0_i32_1 = arith.constant 0 : i32
    return %c0_i32, %c0_i32_0 : i32, i32
  }
  func.func @transform_3(%arg0: i32) -> (i32, i32) {
    %c0_i32 = arith.constant 0 : i32
    %c0_i32_0 = arith.constant 0 : i32
    %c0_i32_1 = arith.constant 0 : i32
    return %c0_i32, %c0_i32_0 : i32, i32
  }
  func.func @transform_4(%arg0: i32) -> (i32, i32) {
    %c0_i32 = arith.constant 0 : i32
    %c0_i32_0 = arith.constant 0 : i32
    %c0_i32_1 = arith.constant 0 : i32
    return %c0_i32, %c0_i32_0 : i32, i32
  }
  func.func @transform_5(%arg0: i32) -> (i32, i32) {
    %c0_i32 = arith.constant 0 : i32
    %c0_i32_0 = arith.constant 0 : i32
    return %arg0, %c0_i32 : i32, i32
  }
}

</mosaic_0001>

<bundles_post_ra>
// kernel: aggregate_forward.1
= control target key start
LH: loop header
LB: loop body
LE: loop exit
PB: predicated region body
PF: predicated region fallthrough
CT: control target
= control target key end

     0   :  { %v283_v3 = vmov 0.0|0.0   ;;  %vm284_vm0 = vmmov 0   ;;  %v285_v6 = vmov 0.0   ;;  %s362_s0 = inlined_call_operand.vmem [shape: f32[8,32], index: 0, kind: input, shape index: {}]   ;;  %s363_s1 = inlined_call_operand.vmem [shape: f32[32,32], index: 1, kind: input, shape index: {}]   ;;  %s364_s2 = inlined_call_operand.vmem [shape: f32[1,32], index: 2, kind: input, shape index: {}]   ;;  %s365_s3 = inlined_call_operand.vmem [shape: f32[32,128], index: 3, kind: input, shape index: {}]   ;;  %s366_s4 = inlined_call_operand.vmem [shape: f32[1,128], index: 4, kind: input, shape index: {}]   ;;  %s367_s5 = inlined_call_operand.hbm [shape: f32[8,128], index: 5, kind: output, shape index: {}]  }
   0x1   :  { %v22_v0 = vld [vmem:[%s363_s1] sm:$0xff]  ;;  %v23_v1 = vld [vmem:[%s363_s1 + $0x8] sm:$0xff]  ;;  %v24_v2 = vld [vmem:[%s363_s1 + $0x10] sm:$0xff]  ;;  %243 = vmatprep.subr.bf16.mxu0 %v283_v3  ;;  %229 = vmatprep.mubr.msk.f32.mxu0 %vm284_vm0, %v285_v6 }
   0x2   :  { %v244_v4 = vpack.c.bf16 %v23_v1, %v22_v0  ;;  %v25_v5 = vld [vmem:[%s363_s1 + $0x18] sm:$0xff]  ;;  %v108_v7 = vld [vmem:[%s365_s3] sm:$0xff]  ;;  %249 = vmatprep.subr.bf16.mxu1 %v283_v3  ;;  %v109_v8 = vld [vmem:[%s365_s3 + $0x8] sm:$0xff]  ;;  %240 = vmatprep.mubr.msk.f32.mxu1 %vm284_vm0, %v285_v6 }
   0x3   :  { %10 = vsyncpa [#allocation3], 0  ;;  %v247_v9 = vpack.c.bf16 %v25_v5, %v24_v2  ;;  %v250_v10 = vpack.c.bf16 %v109_v8, %v108_v7  ;;  %v21_v11 = vld [vmem:[%s362_s0] sm:$0xff]  ;;  %vm33_vm1 = vcmask 261120   ;;  %v110_v12 = vld [vmem:[%s365_s3 + $0x10] sm:$0xff]  ;;  %s286_s13 = smov [#allocation2]  }
   0x4   :  { %245 = vmatpush3.bf16.msra.mxu0 %v244_v4  ;;  %v111_v13 = vld [vmem:[%s365_s3 + $0x18] sm:$0xff]  ;;  %v207_v15 = vld [vmem:[%s364_s2] ss:$0 sm:$0xff]  ;;  %s199_s14 = sshll.u32 %s286_s13, 4  ;;  %s200_s14 = int_to_ptr.vmem [resolvable:$true] %s199_s14 }
   0x5   :  { %246 = vmatprep.subr.bf16.mxu0 %v283_v3  ;;  %251 = vmatpush3.bf16.msra.mxu1 %v250_v10  ;;  %v253_v14 = vpack.c.bf16 %v111_v13, %v110_v12  ;;  %v209_v20 = vld [vmem:[%s366_s4] ss:$0 sm:$0xff]  ;;  %s259_s3 = scalar_lea.vmem %s200_s14, 128  ;;  %p264_p1 = scmp.lt.s32.totalorder %s200_s14, %s200_s14 }
   0x6   :  { %252 = vmatprep.subr.bf16.mxu1 %v283_v3  ;;  %p260_p0 = scmp.ne.s32.totalorder %s200_s14, %s259_s3  ;;  %p265_p2 = scmp.lt.s32.totalorder %s259_s3, %s259_s3 }
   0x8   :  { %248 = vmatpush3.bf16.msra.mxu0 %v247_v9  ;;  %p266_p3 = por %p265_p2, %p264_p1 }
   0x9   :  { %254 = vmatpush3.bf16.msra.mxu1 %v253_v14 }
   0xa   :  { %p267_p4 = pnand %p266_p3, %p260_p0 }
   0xb   :  { %230 = vmatmul.mubr.msk.f32.vlgmr.msra.gmra.mrb[0].mxu0 %vm33_vm1, %v21_v11 }
  0xde   :  { %v103_v16 = vpop.f32.mrb[0].mxu0 }
  0xdf   :  { %v104_v17 = vadd.f32 %v207_v15, %v103_v16  ;;  %v231_v18 = vpop.f32.mrb[1].mxu0 }
  0xe1   :  { %v107_v19 = vmax.f32 %v104_v17, 0.0 }
  0xe3   :  { %241 = vmatmul.mubr.msk.f32.vlgmr.msra.gmra.mrb[0].mxu1 %vm33_vm1, %v107_v19 }
 0x1b6   :  { %v188_v21 = vpop.f32.mrb[0].mxu1 }
 0x1b7   :  { %v189_v22 = vadd.f32 %v209_v20, %v188_v21  ;;  %v242_v23 = vpop.f32.mrb[1].mxu1 }
 0x1b9   :  { %192 = vst [vmem:[#allocation2] sm:$0xff] %v189_v22 }
 0x1ba   :  { %270 = shalt.err (!%p267_p4)
}
 0x1bb   :  { %s271_s16 = scalar_lea.hbm %s367_s5, 128 }
 0x1bc   :  { %p272_p5 = scmp.ne.s32.totalorder %s367_s5, %s271_s16  ;;  %p275_p6 = scmp.lt.u32.totalorder %s271_s16, %s367_s5 }
 0x1be   :  { %p277_p7 = pnand %p275_p6, %p272_p5 }
 0x1c0   :  { %280 = shalt.err (!%p277_p7)
}
 0x1c1   :  { %202 = dma.vmem_to_hbm [thread:$0]  %s200_s14, 128, %s367_s5, [#allocation3]  }
 0x1c2   :  { %281 = dma.done.wait [#allocation3], 128  }
 0x1c3   :  { %282 = vsyncadd [#allocation3], 4294967168 }
 0x1c4   :  { %206 = vsyncpa [#allocation3], 1 }

</bundles_post_ra>
